<compile_context>
chip_gen: v6e
topology: v6e:2x2x1
jax: 0.10.0
libtpu: 0.0.40
codegen_flags: <defaults>
</compile_context>

<pallas_src>
import collections
import functools

import jax
import jax.numpy as jnp
from jax.experimental import pallas as pl
from jax.experimental.pallas import tpu as pltpu

LANE = 128             # lane width: last-dim alignment target
MAX_TM = 1024          # largest batch tile (rows) per grid step
MIN_SPLIT_ROWS = 512   # batches >= this get >=2 batch tiles (v7x: 2 TensorCores)


def _round_up(n, m):
    return ((n + m - 1) // m) * m


def _cdiv(a, b):
    return (a + b - 1) // b


_HW_CACHE = {}


def _vmem_budget_bytes():
    """~80% of physical per-core VMEM (128 MiB on v5e/v6e, 64 MiB on v7x)."""
    if "budget" not in _HW_CACHE:
        cap = 64 * 1024 * 1024  # conservative fallback (v7x per-core)
        try:
            info = pltpu.get_tpu_info()
            cap = int(getattr(info, "vmem_capacity_bytes", cap) or cap)
        except Exception:
            pass
        _HW_CACHE["budget"] = int(cap * 0.8)
    return _HW_CACHE["budget"]


def _default_epilogue_dtype():
    """bf16 epilogue on chips with a bf16 VPU (v6e/v7x); f32 on v5e and older."""
    try:
        kind = jax.devices()[0].device_kind.lower()
    except Exception:
        return jnp.float32
    if any(v in kind for v in ("v2", "v3", "v4", "v5")):
        return jnp.float32
    return jnp.bfloat16


FFNParams = collections.namedtuple(
    "FFNParams",
    ["w1", "b1", "w2", "b2", "f_in", "f_out", "f_h_p", "f_out_p", "epi_dtype"])


def prepare_ffn_params(w1, b1, w2, b2, *, compute_dtype=jnp.bfloat16,
                       epilogue_dtype=None):
    """Pad + cast weights ONCE (hoisted out of the per-call path).

    w1: (F_in, F_in), b1: (F_in,), w2: (F_in, F_out), b2: (F_out,)
    Weights are in (in, out) layout (transpose PyTorch's (out, in) first).
    Zero padding is exact: padded hidden units have zero weights and zero bias
    (ReLU(0)=0) and zero w2 rows; padded output columns are sliced off.
    """
    if epilogue_dtype is None:
        epilogue_dtype = _default_epilogue_dtype()
    f_in = int(w1.shape[0])
    f_h = int(w1.shape[1])            # == f_in for this module
    f_out = int(w2.shape[1])
    f_h_p = _round_up(f_h, LANE)
    f_out_p = _round_up(f_out, LANE)
    w1p = jnp.pad(w1, ((0, 0), (0, f_h_p - f_h))).astype(compute_dtype)
    b1p = jnp.pad(b1.reshape(1, -1), ((0, 0), (0, f_h_p - f_h))).astype(epilogue_dtype)
    w2p = jnp.pad(w2, ((0, f_h_p - f_h), (0, f_out_p - f_out))).astype(compute_dtype)
    b2p = jnp.pad(b2.reshape(1, -1), ((0, 0), (0, f_out_p - f_out))).astype(jnp.float32)
    return FFNParams(w1p, b1p, w2p, b2p, f_in, f_out, f_h_p, f_out_p,
                     jnp.dtype(epilogue_dtype))


# ----------------------------- kernels --------------------------------------

def _ffn_kernel_resident(x_ref, w1_ref, b1_ref, w2_ref, b2_ref, o_ref, *,
                         epi_dtype):
    # x: (TM, F_in) | w1: (F_in, F_h_p) | b1: (1, F_h_p) epi dtype
    # w2: (F_h_p, F_out_p) | b2: (1, F_out_p) f32 | o: (TM, F_out_p)
    h = jnp.dot(x_ref[...].astype(w1_ref.dtype), w1_ref[...],
                preferred_element_type=jnp.float32)
    h = jnp.maximum(h.astype(epi_dtype) + b1_ref[...], 0.0)   # bias + ReLU
    # dropout(p=0) == identity.
    # TODO(synk): stochastic dropout (p>0 training) not implemented; not needed here.
    y = jnp.dot(h.astype(w2_ref.dtype), w2_ref[...],
                preferred_element_type=jnp.float32)
    o_ref[...] = (y + b2_ref[...]).astype(o_ref.dtype)


def _ffn_kernel_tiled(x_ref, w1_ref, b1_ref, w2_ref, b2_ref, o_ref, acc_ref, *,
                      epi_dtype):
    # Hidden-dim tiled: grid = (batch tiles, hidden tiles); hidden axis last
    # ("arbitrary"), f32 output accumulator in VMEM scratch.
    j = pl.program_id(1)

    @pl.when(j == 0)
    def _():
        acc_ref[...] = jnp.zeros_like(acc_ref)

    h = jnp.dot(x_ref[...].astype(w1_ref.dtype), w1_ref[...],
                preferred_element_type=jnp.float32)
    h = jnp.maximum(h.astype(epi_dtype) + b1_ref[...], 0.0)
    acc_ref[...] += jnp.dot(h.astype(w2_ref.dtype), w2_ref[...],
                            preferred_element_type=jnp.float32)

    @pl.when(j == pl.num_programs(1) - 1)
    def _():
        o_ref[...] = (acc_ref[...] + b2_ref[...]).astype(o_ref.dtype)


# ------------------------- VMEM accounting ----------------------------------

def _resident_vmem_bytes(tm, f_in, f_h_p, f_out_p, x_bytes, epi_bytes, out_bytes):
    weights = 2 * (f_in * f_h_p + f_h_p * f_out_p) * 2         # double-buffered bf16
    biases = 2 * (f_h_p * epi_bytes + f_out_p * 4)
    io = 2 * tm * f_in * x_bytes + 2 * tm * f_out_p * out_bytes
    temps = tm * f_h_p * (4 + epi_bytes + 2) + tm * f_out_p * 4  # h f32/epi/bf16 + y f32
    return weights + biases + io + temps


def _tiled_vmem_bytes(tm, th, f_in, f_out_p, x_bytes, epi_bytes, out_bytes):
    weights = 2 * (f_in * th + th * f_out_p) * 2
    biases = 2 * (th * epi_bytes + f_out_p * 4)
    io = 2 * tm * f_in * x_bytes + 2 * tm * f_out_p * out_bytes
    acc = tm * f_out_p * 4
    temps = tm * th * (4 + epi_bytes + 2) + tm * f_out_p * 4
    return weights + biases + io + acc + temps


# ----------------------------- wrapper ---------------------------------------

def feed_forward_network(x, params: FFNParams, *, hidden_tile=None):
    """y = Linear2(ReLU(Linear1(x))); returns (..., F_out) in x.dtype."""
    orig_dtype = x.dtype
    lead = x.shape[:-1]
    f_in, f_out = params.f_in, params.f_out
    f_h_p, f_out_p = params.f_h_p, params.f_out_p
    assert x.shape[-1] == f_in, (x.shape, f_in)

    x2 = x.reshape(-1, f_in)
    b = x2.shape[0]

    budget = _vmem_budget_bytes()
    x_bytes = x2.dtype.itemsize
    out_bytes = jnp.dtype(orig_dtype).itemsize
    epi_bytes = params.epi_dtype.itemsize

    # ---- batch tile (TM): derived from b, multiple of 16 (bf16 sublanes);
    #      >=2 grid steps for large batches so v7x can shard over both TCs. ----
    nb = max(1, _cdiv(b, MAX_TM))
    if nb == 1 and b >= MIN_SPLIT_ROWS:
        nb = 2
    tm = _round_up(_cdiv(b, nb), 16)

    # ---- path selection: resident weights if they (plus temporaries) fit. ----
    use_tiled = hidden_tile is not None
    th = f_h_p
    if use_tiled:
        th = int(hidden_tile)
        assert th % LANE == 0 and f_h_p % th == 0, (th, f_h_p)
        tm = min(tm, 512)
    elif _resident_vmem_bytes(tm, f_in, f_h_p, f_out_p, x_bytes, epi_bytes,
                              out_bytes) > budget:
        # Try shrinking TM first (keeps weights resident).
        t = tm
        while (t > 256 and
               _resident_vmem_bytes(t, f_in, f_h_p, f_out_p, x_bytes,
                                    epi_bytes, out_bytes) > budget):
            t = max(256, _round_up(t // 2, 16))
        if _resident_vmem_bytes(t, f_in, f_h_p, f_out_p, x_bytes, epi_bytes,
                                out_bytes) <= budget:
            tm = t
        else:
            # Hidden-dim tiling bounds the resident weight footprint (v7x).
            use_tiled = True
            tm = min(tm, 512)
            th = LANE
            n128 = f_h_p // LANE
            for d in range(n128, 0, -1):          # largest divisor tile that fits
                if n128 % d:
                    continue
                cand = d * LANE
                if _tiled_vmem_bytes(tm, cand, f_in, f_out_p, x_bytes,
                                     epi_bytes, out_bytes) <= budget:
                    th = cand
                    break

    b_p = _round_up(b, tm)
    if b_p != b:
        x2 = jnp.pad(x2, ((0, b_p - b), (0, 0)))   # padded rows are sliced off

    cost = pl.CostEstimate(
        flops=int(2 * b_p * (f_in * f_h_p + f_h_p * f_out_p)),
        transcendentals=0,
        bytes_accessed=int(b_p * f_in * x_bytes
                           + params.w1.size * 2 + params.w2.size * 2
                           + params.b1.size * epi_bytes + params.b2.size * 4
                           + b_p * f_out_p * out_bytes),
    )
    compiler_params = dict(vmem_limit_bytes=int(budget))

    if not use_tiled:
        grid = (b_p // tm,)
        kernel = functools.partial(_ffn_kernel_resident,
                                   epi_dtype=params.epi_dtype)
        out = pl.pallas_call(
            kernel,
            out_shape=jax.ShapeDtypeStruct((b_p, f_out_p), orig_dtype),
            grid_spec=pltpu.PrefetchScalarGridSpec(
                num_scalar_prefetch=0,
                grid=grid,
                in_specs=[
                    pl.BlockSpec((tm, f_in), lambda i: (i, 0)),        # x tile
                    pl.BlockSpec((f_in, f_h_p), lambda i: (0, 0)),     # w1 (resident)
                    pl.BlockSpec((1, f_h_p), lambda i: (0, 0)),        # b1
                    pl.BlockSpec((f_h_p, f_out_p), lambda i: (0, 0)),  # w2 (resident)
                    pl.BlockSpec((1, f_out_p), lambda i: (0, 0)),      # b2
                ],
                out_specs=pl.BlockSpec((tm, f_out_p), lambda i: (i, 0)),
            ),
            compiler_params=pltpu.CompilerParams(
                dimension_semantics=("parallel",), **compiler_params),
            cost_estimate=cost,
        )(x2, params.w1, params.b1, params.w2, params.b2)
    else:
        grid = (b_p // tm, f_h_p // th)
        kernel = functools.partial(_ffn_kernel_tiled,
                                   epi_dtype=params.epi_dtype)
        out = pl.pallas_call(
            kernel,
            out_shape=jax.ShapeDtypeStruct((b_p, f_out_p), orig_dtype),
            grid_spec=pltpu.PrefetchScalarGridSpec(
                num_scalar_prefetch=0,
                grid=grid,
                in_specs=[
                    pl.BlockSpec((tm, f_in), lambda i, j: (i, 0)),       # x tile
                    pl.BlockSpec((f_in, th), lambda i, j: (0, j)),       # w1 col tile
                    pl.BlockSpec((1, th), lambda i, j: (0, j)),          # b1 tile
                    pl.BlockSpec((th, f_out_p), lambda i, j: (j, 0)),    # w2 row tile
                    pl.BlockSpec((1, f_out_p), lambda i, j: (0, 0)),     # b2
                ],
                out_specs=pl.BlockSpec((tm, f_out_p), lambda i, j: (i, 0)),
                scratch_shapes=[pltpu.VMEM((tm, f_out_p), jnp.float32)],
            ),
            compiler_params=pltpu.CompilerParams(
                dimension_semantics=("parallel", "arbitrary"), **compiler_params),
            cost_estimate=cost,
        )(x2, params.w1, params.b1, params.w2, params.b2)

    return out[:b, :f_out].reshape(*lead, f_out)


def reference(x, w1, b1, w2, b2):
    h = jnp.maximum(x @ w1 + b1, 0.0)
    return h @ w2 + b2


if __name__ == "__main__":
    # --- test 1: module-sized small shapes (resident-weight fast path) -------
    key = jax.random.PRNGKey(0)
    batch, in_features, out_features = 8, 32, 16
    k_x, k_w1, k_b1, k_w2, k_b2 = jax.random.split(key, 5)
    lim = 1.0 / jnp.sqrt(in_features)
    x = jax.random.normal(k_x, (batch, in_features), dtype=jnp.float32)
    w1 = jax.random.uniform(k_w1, (in_features, in_features), jnp.float32, -lim, lim)
    b1 = jax.random.uniform(k_b1, (in_features,), jnp.float32, -lim, lim)
    w2 = jax.random.uniform(k_w2, (in_features, out_features), jnp.float32, -lim, lim)
    b2 = jax.random.uniform(k_b2, (out_features,), jnp.float32, -lim, lim)

    params = prepare_ffn_params(w1, b1, w2, b2)     # padding/cast hoisted: once
    y = feed_forward_network(x, params)
    jax.block_until_ready(y)

    y_ref = reference(x, w1, b1, w2, b2)
    assert y.shape == (batch, out_features)
    assert jnp.allclose(y, y_ref, atol=3e-2, rtol=3e-2), float(
        jnp.max(jnp.abs(y - y_ref)))

    # --- test 2: exercise the hidden-tiled (accumulator) path ----------------
    batch2, f_in2, f_out2 = 64, 256, 16
    k_x, k_w1, k_b1, k_w2, k_b2 = jax.random.split(jax.random.PRNGKey(1), 5)
    lim2 = 1.0 / jnp.sqrt(f_in2)
    xb = jax.random.normal(k_x, (batch2, f_in2), dtype=jnp.float32)
    w1b = jax.random.uniform(k_w1, (f_in2, f_in2), jnp.float32, -lim2, lim2)
    b1b = jax.random.uniform(k_b1, (f_in2,), jnp.float32, -lim2, lim2)
    w2b = jax.random.uniform(k_w2, (f_in2, f_out2), jnp.float32, -lim2, lim2)
    b2b = jax.random.uniform(k_b2, (f_out2,), jnp.float32, -lim2, lim2)

    params2 = prepare_ffn_params(w1b, b1b, w2b, b2b)
    y2 = feed_forward_network(xb, params2, hidden_tile=128)   # force tiled path
    jax.block_until_ready(y2)
    y2_ref = reference(xb, w1b, b1b, w2b, b2b)
    assert jnp.allclose(y2, y2_ref, atol=3e-2, rtol=3e-2), float(
        jnp.max(jnp.abs(y2 - y2_ref)))

    print("KERNEL_OK")
</pallas_src>

<mosaic_0001>
module attributes {stable_mosaic.version = 11 : i64} {
  func.func @_ffn_kernel_resident(%arg0: i32, %arg1: memref<16x32xf32, #tpu.memory_space<vmem>>, %arg2: memref<32x128xbf16, #tpu.memory_space<vmem>>, %arg3: memref<1x128xbf16, #tpu.memory_space<vmem>>, %arg4: memref<128x128xbf16, #tpu.memory_space<vmem>>, %arg5: memref<1x128xf32, #tpu.memory_space<vmem>>, %arg6: memref<16x128xf32, #tpu.memory_space<vmem>>) attributes {dimension_semantics = [#tpu.dimension_semantics<parallel>], iteration_bounds = array<i64: 1>, scalar_prefetch = 0 : i64, scratch_operands = 0 : i64, tpu.core_type = #tpu.core_type<tc>, window_params = [{transform_indices = @transform_0, window_bounds = array<i64: 16, 32>}, {pipeline_mode = #tpu.pipeline_mode<synchronous>, transform_indices = @transform_1, window_bounds = array<i64: 32, 128>}, {pipeline_mode = #tpu.pipeline_mode<synchronous>, transform_indices = @transform_2, window_bounds = array<i64: 1, 128>}, {pipeline_mode = #tpu.pipeline_mode<synchronous>, transform_indices = @transform_3, window_bounds = array<i64: 128, 128>}, {pipeline_mode = #tpu.pipeline_mode<synchronous>, transform_indices = @transform_4, window_bounds = array<i64: 1, 128>}, {transform_indices = @transform_5, window_bounds = array<i64: 16, 128>}]} {
    %c0 = arith.constant 0 : index
    %c0_0 = arith.constant 0 : index
    %0 = vector.load %arg1[%c0, %c0_0] : memref<16x32xf32, #tpu.memory_space<vmem>>, vector<16x32xf32>
    %1 = arith.truncf %0 : vector<16x32xf32> to vector<16x32xbf16>
    %c0_1 = arith.constant 0 : index
    %c0_2 = arith.constant 0 : index
    %2 = vector.load %arg2[%c0_1, %c0_2] : memref<32x128xbf16, #tpu.memory_space<vmem>>, vector<32x128xbf16>
    %cst = arith.constant dense<0.000000e+00> : vector<16x128xf32>
    %3 = tpu.matmul %1, %2, %cst {dimension_numbers = #tpu.dot_dimension_numbers<[1], [0], [0], [1], [0, 0, 1, 1], [], []>} : vector<16x32xbf16>, vector<32x128xbf16>, vector<16x128xf32> -> vector<16x128xf32>
    %4 = arith.truncf %3 : vector<16x128xf32> to vector<16x128xbf16>
    %c0_3 = arith.constant 0 : index
    %c0_4 = arith.constant 0 : index
    %5 = vector.load %arg3[%c0_3, %c0_4] : memref<1x128xbf16, #tpu.memory_space<vmem>>, vector<1x128xbf16>
    %6 = vector.broadcast %5 : vector<1x128xbf16> to vector<16x128xbf16>
    %7 = arith.addf %4, %6 : vector<16x128xbf16>
    %cst_5 = arith.constant 0.000000e+00 : bf16
    %8 = vector.broadcast %cst_5 : bf16 to vector<16x128xbf16>
    %9 = arith.maximumf %7, %8 : vector<16x128xbf16>
    %c0_6 = arith.constant 0 : index
    %c0_7 = arith.constant 0 : index
    %10 = vector.load %arg4[%c0_6, %c0_7] : memref<128x128xbf16, #tpu.memory_space<vmem>>, vector<128x128xbf16>
    %cst_8 = arith.constant dense<0.000000e+00> : vector<16x128xf32>
    %11 = tpu.matmul %9, %10, %cst_8 {dimension_numbers = #tpu.dot_dimension_numbers<[1], [0], [0], [1], [0, 0, 1, 1], [], []>} : vector<16x128xbf16>, vector<128x128xbf16>, vector<16x128xf32> -> vector<16x128xf32>
    %c0_9 = arith.constant 0 : index
    %c0_10 = arith.constant 0 : index
    %12 = vector.load %arg5[%c0_9, %c0_10] : memref<1x128xf32, #tpu.memory_space<vmem>>, vector<1x128xf32>
    %13 = vector.broadcast %12 : vector<1x128xf32> to vector<16x128xf32>
    %14 = arith.addf %11, %13 : vector<16x128xf32>
    %c0_11 = arith.constant 0 : index
    %c0_12 = arith.constant 0 : index
    %15 = vector.load %arg6[%c0_11, %c0_12] : memref<16x128xf32, #tpu.memory_space<vmem>>, vector<16x128xf32>
    tpu.vector_store %arg6[%c0_11, %c0_12], %14 {strides = array<i32>} : memref<16x128xf32, #tpu.memory_space<vmem>>, vector<16x128xf32>,
    return
  }
  func.func @transform_0(%arg0: i32) -> (i32, i32) {
    %c0_i32 = arith.constant 0 : i32
    %c0_i32_0 = arith.constant 0 : i32
    return %arg0, %c0_i32 : i32, i32
  }
  func.func @transform_1(%arg0: i32) -> (i32, i32) {
    %c0_i32 = arith.constant 0 : i32
    %c0_i32_0 = arith.constant 0 : i32
    %c0_i32_1 = arith.constant 0 : i32
    return %c0_i32, %c0_i32_0 : i32, i32
  }
  func.func @transform_2(%arg0: i32) -> (i32, i32) {
    %c0_i32 = arith.constant 0 : i32
    %c0_i32_0 = arith.constant 0 : i32
    %c0_i32_1 = arith.constant 0 : i32
    return %c0_i32, %c0_i32_0 : i32, i32
  }
  func.func @transform_3(%arg0: i32) -> (i32, i32) {
    %c0_i32 = arith.constant 0 : i32
    %c0_i32_0 = arith.constant 0 : i32
    %c0_i32_1 = arith.constant 0 : i32
    return %c0_i32, %c0_i32_0 : i32, i32
  }
  func.func @transform_4(%arg0: i32) -> (i32, i32) {
    %c0_i32 = arith.constant 0 : i32
    %c0_i32_0 = arith.constant 0 : i32
    %c0_i32_1 = arith.constant 0 : i32
    return %c0_i32, %c0_i32_0 : i32, i32
  }
  func.func @transform_5(%arg0: i32) -> (i32, i32) {
    %c0_i32 = arith.constant 0 : i32
    %c0_i32_0 = arith.constant 0 : i32
    return %arg0, %c0_i32 : i32, i32
  }
}

</mosaic_0001>

<bundles_post_ra>
// kernel: tpu_custom_call.1
= control target key start
LH: loop header
LB: loop body
LE: loop exit
PB: predicated region body
PF: predicated region fallthrough
CT: control target
= control target key end

     0   :  { %10 = vsyncpa [#allocation3], 0  ;;  %s494_s0 = inlined_call_operand.hbm [shape: f32[16,32], index: 0, kind: input, shape index: {}]   ;;  %s495_s1 = inlined_call_operand.hbm [shape: bf16[32,128], index: 1, kind: input, shape index: {}]   ;;  %s496_s2 = inlined_call_operand.vmem [shape: bf16[1,128], index: 2, kind: input, shape index: {}]   ;;  %s497_s3 = inlined_call_operand.hbm [shape: bf16[128,128], index: 3, kind: input, shape index: {}]   ;;  %s498_s4 = inlined_call_operand.vmem [shape: f32[1,128], index: 4, kind: input, shape index: {}]   ;;  %s499_s5 = inlined_call_operand.hbm [shape: f32[16,128], index: 5, kind: output, shape index: {}]  }
   0x1   :  { %11 = vsyncpa [#allocation6], 0 }
   0x2   :  { %12 = vsyncpa [#allocation4], 0  ;;  %s429_s18 = smov [#allocation5]  }
   0x3   :  { %s30_s19 = sshll.u32 %s429_s18, 4  ;;  %s31_s19 = int_to_ptr.vmem [resolvable:$true] %s30_s19 }
   0x4   :  { %s351_s20 = scalar_lea.vmem %s31_s19, 256  ;;  %p356_p1 = scmp.lt.s32.totalorder %s31_s19, %s31_s19 }
   0x5   :  { %p352_p0 = scmp.ne.s32.totalorder %s31_s19, %s351_s20  ;;  %p357_p2 = scmp.lt.s32.totalorder %s351_s20, %s351_s20 }
   0x7   :  { %p358_p3 = por %p357_p2, %p356_p1 }
   0x9   :  { %p359_p4 = pnand %p358_p3, %p352_p0 }
   0xb   :  { %362 = shalt.err (!%p359_p4)
}
   0xc   :  { %s430_s21 = smov 64   ;;  %s431_s22 = smov 4  }
   0xd   :  { %36 = dma.hbm_to_vmem [thread:$0]  %s495_s1, 256, %s31_s19, [#allocation6], %s430_s21, %s430_s21, %s431_s22  }
   0xe   :  { %s432_s25 = smov [#allocation2]  }
   0xf   :  { %s18_s26 = sshll.u32 %s432_s25, 4  ;;  %s19_s26 = int_to_ptr.vmem [resolvable:$true] %s18_s26 }
  0x10   :  { %s371_s27 = scalar_lea.vmem %s19_s26, 256  ;;  %p376_p6 = scmp.lt.s32.totalorder %s19_s26, %s19_s26 }
  0x11   :  { %p372_p5 = scmp.ne.s32.totalorder %s19_s26, %s371_s27  ;;  %p377_p7 = scmp.lt.s32.totalorder %s371_s27, %s371_s27 }
  0x13   :  { %p378_p8 = por %p377_p7, %p376_p6 }
  0x15   :  { %p379_p9 = pnand %p378_p8, %p372_p5 }
  0x17   :  { %382 = shalt.err (!%p379_p9)
}
  0x18   :  { %s433_s28 = smov 128   ;;  %s434_s29 = smov 8  }
  0x19   :  { %24 = dma.hbm_to_vmem [thread:$0]  %s494_s0, 256, %s19_s26, [#allocation3], %s433_s28, %s433_s28, %s434_s29  }
  0x1a   :  { %s435_s1 = smov [#allocation7]  }
  0x1b   :  { %s44_s7 = sshll.u32 %s435_s1, 4  ;;  %s45_s7 = int_to_ptr.vmem [resolvable:$true] %s44_s7 }
  0x1c   :  { %s391_s8 = scalar_lea.vmem %s45_s7, 1024  ;;  %p396_p11 = scmp.lt.s32.totalorder %s45_s7, %s45_s7 }
  0x1d   :  { %p392_p10 = scmp.ne.s32.totalorder %s45_s7, %s391_s8  ;;  %p397_p12 = scmp.lt.s32.totalorder %s391_s8, %s391_s8 }
  0x1f   :  { %p398_p13 = por %p397_p12, %p396_p11 }
  0x21   :  { %p399_p0 = pnand %p398_p13, %p392_p10 }
  0x23   :  { %402 = shalt.err (!%p399_p0)
}
  0x24   :  { %50 = dma.hbm_to_vmem [thread:$0]  %s497_s3, 1024, %s45_s7, [#allocation6], %s430_s21, %s430_s21, %s431_s22  }
  0x25   :  { %423 = dma.done.wait [#allocation3], 256  }
  0x26   :  { %424 = vsyncadd [#allocation3], 4294967040 }
  0x27   :  { %425 = dma.done.wait [#allocation6], 1280  }
  0x28   :  { %426 = vsyncadd [#allocation6], 4294966016  ;;  %v436_v0 = vmov 0.0   ;;  %vm437_vm0 = vmmov 0   ;;  %v333_v1 = vld [vmem:[#allocation5 + $0x8] sm:$0xff]   ;;  %v334_v2 = vld [vmem:[#allocation5] sm:$0xff]   ;;  %v132_v14 = vlaneseq }
  0x29   :  { %294 = vmatprep.subr.bf16.mxu0 %v436_v0  ;;  %298 = vmatprep.mubr.msk.bf16.mxu0 %vm437_vm0, %v436_v0  ;;  %v63_v3 = vld [vmem:[#allocation2] sm:$0xff]  ;;  %v64_v4 = vld [vmem:[#allocation2 + $0x8] sm:$0xff]  ;;  %v335_v5 = vld [vmem:[#allocation7 + $0x38] sm:$0xff]   ;;  %vm82_vm1 = vcmask 261120   ;;  %v438_v26 = vmov 0  }
  0x2a   :  { %302 = vmatprep.subr.bf16.mxu1 %v436_v0  ;;  %318 = vmatprep.mubr.msk.bf16.mxu1 %vm437_vm0, %v436_v0  ;;  %v65_v6 = vpack.c.bf16 %v64_v4, %v63_v3  ;;  %v336_v7 = vld [vmem:[#allocation7 + $0x30] sm:$0xff]   ;;  %v337_v8 = vld [vmem:[#allocation7 + $0x28] sm:$0xff]   ;;  %v338_v9 = vld [vmem:[#allocation7 + $0x20] sm:$0xff]   ;;  %v133_v15 = vshrl.u32 %v132_v14, 7 }
  0x2b   :  { %295 = vmatpush3.bf16.msra.mxu0 %v333_v1  ;;  %303 = vmatpush3.bf16.msra.mxu1 %v335_v5  ;;  %v339_v10 = vld [vmem:[#allocation7 + $0x18] sm:$0xff]   ;;  %v340_v11 = vld [vmem:[#allocation7 + $0x10] sm:$0xff]   ;;  %v341_v12 = vld [vmem:[#allocation7 + $0x8] sm:$0xff]  }
  0x2c   :  { %296 = vmatprep.subr.bf16.mxu0 %v436_v0  ;;  %304 = vmatprep.subr.bf16.mxu1 %v436_v0  ;;  %v342_v13 = vld [vmem:[#allocation7] sm:$0xff]   ;;  %v134_v18 = vsub.s32 0, %v133_v15 }
  0x2d   :  { %v128_v16 = vld [vmem:[%s496_s2] sm:$0x1]  ;;  %s439_s2 = smov [#allocation8]  }
  0x2e   :  { %v130_v17 = vpack.i.b16 %v128_v16, %v128_v16  ;;  %v273_v28 = vld [vmem:[%s498_s4] ss:$0 sm:$0xff]  ;;  %s257_s13 = sshll.u32 %s439_s2, 4  ;;  %s258_s13 = int_to_ptr.vmem [resolvable:$true] %s257_s13 }
  0x2f   :  { %297 = vmatpush3.bf16.msra.mxu0 %v334_v2  ;;  %305 = vmatpush3.bf16.msra.mxu1 %v336_v7  ;;  %s403_s14 = scalar_lea.vmem %s258_s13, 256  ;;  %p408_p2 = scmp.lt.s32.totalorder %s258_s13, %s258_s13 }
  0x30   :  { %306 = vmatprep.subr.bf16.mxu1 %v436_v0  ;;  %v135_v21 = vrot.slane %v130_v17, %v134_v18  ;;  %p404_p1 = scmp.ne.s32.totalorder %s258_s13, %s403_s14  ;;  %p409_p3 = scmp.lt.s32.totalorder %s403_s14, %s403_s14 }
  0x32   :  { %299 = vmatmul.mubr.msk.bf16.vlgmr.msra.gmra.mxu0 %vm82_vm1, %v65_v6  ;;  %p410_p4 = por %p409_p3, %p408_p2 }
  0x33   :  { %307 = vmatpush3.bf16.msra.mxu1 %v337_v8 }
  0x34   :  { %308 = vmatprep.subr.bf16.mxu1 %v436_v0  ;;  %p411_p5 = pnand %p410_p4, %p404_p1 }
  0x37   :  { %309 = vmatpush3.bf16.msra.mxu1 %v338_v9 }
  0x38   :  { %310 = vmatprep.subr.bf16.mxu1 %v436_v0 }
  0x3b   :  { %311 = vmatpush3.bf16.msra.mxu1 %v339_v10 }
  0x3c   :  { %312 = vmatprep.subr.bf16.mxu1 %v436_v0 }
  0x3f   :  { %313 = vmatpush3.bf16.msra.mxu1 %v340_v11 }
  0x40   :  { %314 = vmatprep.subr.bf16.mxu1 %v436_v0 }
  0x43   :  { %315 = vmatpush3.bf16.msra.mxu1 %v341_v12 }
  0x44   :  { %316 = vmatprep.subr.bf16.mxu1 %v436_v0 }
  0x47   :  { %317 = vmatpush3.bf16.msra.mxu1 %v342_v13 }
  0xf2   :  { %v120_v19 = vpop.f32.mrf.mxu0 }
  0xf4   :  { %v300_v20 = vpop.f32.mrf.mxu0 }
  0xf6   :  { %v123_v22 = vpop.f32.mrf.mxu0 }
  0xf7   :  { %v127_v23 = vpack.c.bf16 %v123_v22, %v120_v19 }
  0xf8   :  { %v301_v24 = vpop.f32.mrf.mxu0 }
  0xf9   :  { %v136_v25 = vadd.bf16 %v135_v21, %v127_v23 }
  0xfb   :  { %v137_v27 = vmax.bf16 %v438_v26, %v136_v25 }
  0xfd   :  { %319 = vmatmul.mubr.bf16.vlgmr.msra.gmra.mxu1 %v137_v27 }
 0x1bd   :  { %v243_v29 = vpop.f32.mrf.mxu1 }
 0x1be   :  { %v244_v30 = vadd.f32 %v273_v28, %v243_v29 }
 0x1bf   :  { %v320_v31 = vpop.f32.mrf.mxu1 }
 0x1c0   :  { %250 = vst [vmem:[#allocation8] sm:$0xff] %v244_v30 }
 0x1c1   :  { %v246_v32 = vpop.f32.mrf.mxu1 }
 0x1c2   :  { %v247_v33 = vadd.f32 %v273_v28, %v246_v32 }
 0x1c3   :  { %v321_v34 = vpop.f32.mrf.mxu1 }
 0x1c4   :  { %251 = vst [vmem:[#allocation8 + $0x8] sm:$0xff] %v247_v33 }
 0x1c5   :  { %414 = shalt.err (!%p411_p5)
}
 0x1c6   :  { %263 = dma.vmem_to_hbm [thread:$0]  %s258_s13, 256, %s499_s5, [#allocation4], %s433_s28, %s433_s28, %s434_s29  }
 0x1c7   :  { %427 = dma.done.wait [#allocation4], 256  }
 0x1c8   :  { %428 = vsyncadd [#allocation4], 4294967040 }
 0x1c9   :  { %267 = vsyncpa [#allocation3], 1 }
 0x1ca   :  { %268 = vsyncpa [#allocation6], 1 }
 0x1cb   :  { %269 = vsyncpa [#allocation4], 1 }

</bundles_post_ra>
